<compile_context>
chip_gen: v7x
topology: tpu7x:2x2x1
jax: 0.10.0
libtpu: 0.0.40
codegen_flags: <defaults>
</compile_context>

<pallas_src>
import functools

import jax
import jax.numpy as jnp
from jax import lax
from jax.experimental import pallas as pl
from jax.experimental.pallas import tpu as pltpu


def _round_up(x: int, m: int) -> int:
    return (x + m - 1) // m * m


def _sublane(dtype) -> int:
    """Sublane multiple for packed row tiles (8 f32 / 16 bf16 / 32 int8)."""
    return {4: 8, 2: 16, 1: 32}.get(jnp.dtype(dtype).itemsize, 8)


# ---------------------------------------------------------------------------
# Kernel
# ---------------------------------------------------------------------------
def _ffn_kernel(x_ref, w1_ref, b1_ref, w2_ref, b2_ref, g_ref, beta_ref,
                o_ref, acc_ref, *, eps: float):
    """One (row-tile, hidden-tile) grid step of FFN + residual + LayerNorm.

    grid = (row_blocks, f_blocks); the f axis ("arbitrary", innermost) streams
    slices of dim_feedforward and accumulates linear2 partial products into an
    f32 scratch; residual add + LayerNorm run on the last f step only.
    """
    fk = pl.program_id(1)
    nf = pl.num_programs(1)

    @pl.when(fk == 0)
    def _init():
        acc_ref[...] = jnp.zeros_like(acc_ref)

    x = x_ref[...]                                    # (tm, d), activation dtype
    # linear1 (this hidden slice) + bias + relu: MXU in the weight dtype
    # (bf16 by default), f32 accumulation.
    h = jnp.dot(x.astype(w1_ref.dtype), w1_ref[...],
                preferred_element_type=jnp.float32)
    h = jnp.maximum(h + b1_ref[...].astype(jnp.float32), 0.0)
    # TODO(synk): only activation='relu' (module default); gelu/glu and the
    # normalize_before=True (forward_pre) path are not implemented.

    # linear2 partial product, accumulated over hidden slices in f32.
    acc_ref[...] += jnp.dot(h.astype(w2_ref.dtype), w2_ref[...],
                            preferred_element_type=jnp.float32)

    @pl.when(fk == nf - 1)
    def _finalize():
        z = (x.astype(jnp.float32) + acc_ref[...]
             + b2_ref[...].astype(jnp.float32))
        mean = jnp.mean(z, axis=-1, keepdims=True)
        zc = z - mean
        var = jnp.mean(zc * zc, axis=-1, keepdims=True)
        y = (zc * lax.rsqrt(var + eps) * g_ref[...].astype(jnp.float32)
             + beta_ref[...].astype(jnp.float32))
        o_ref[...] = y.astype(o_ref.dtype)


# ---------------------------------------------------------------------------
# Parameter prep (run once at setup time, not per forward call)
# ---------------------------------------------------------------------------
def prepare_ffn_params(w1, b1, w2, b2, gamma, beta, *,
                       matmul_dtype=jnp.bfloat16):
    """w1 = linear1.weight.T (d_model, dim_ff); w2 = linear2.weight.T (dim_ff, d_model).

    Weights are cast once to the MXU dtype; biases / LayerNorm params become
    f32 (1, features) lane rows.
    """
    d_model, dim_ff = w1.shape
    assert w2.shape == (dim_ff, d_model)
    assert b1.shape == (dim_ff,) and b2.shape == (d_model,)
    assert gamma.shape == (d_model,) and beta.shape == (d_model,)
    return {
        "w1": w1.astype(matmul_dtype),
        "b1": b1.astype(jnp.float32).reshape(1, dim_ff),
        "w2": w2.astype(matmul_dtype),
        "b2": b2.astype(jnp.float32).reshape(1, d_model),
        "gamma": gamma.astype(jnp.float32).reshape(1, d_model),
        "beta": beta.astype(jnp.float32).reshape(1, d_model),
    }


# ---------------------------------------------------------------------------
# Tiling / VMEM heuristics
# ---------------------------------------------------------------------------
_VMEM_TARGET = 48 * 1024 * 1024     # conservative: v7x has 64 MiB per TensorCore
_VMEM_CAP = 56 * 1024 * 1024        # never request (nearly) all of v7x VMEM


def _pick_hidden_tile(d_model, dim_ff, w_itemsize, weight_budget_bytes):
    """Full dim_ff (resident weights) if W1+W2 x2 buffers fit the budget, else
    the largest 128-multiple divisor of dim_ff whose slices fit."""
    per_f = 2 * d_model * w_itemsize              # one W1 column + one W2 row
    if 2 * dim_ff * per_f <= weight_budget_bytes or dim_ff % 128 != 0:
        return dim_ff
    cands = [t for t in range(128, dim_ff, 128) if dim_ff % t == 0]
    if not cands:
        return dim_ff
    fits = [t for t in cands if 2 * t * per_f <= weight_budget_bytes]
    return max(fits) if fits else min(cands)


def _vmem_bytes(tm, d_model, tf, x_dtype, out_dtype, w_dtype):
    it = lambda dt: jnp.dtype(dt).itemsize
    x_b = 2 * tm * d_model * it(x_dtype)          # double-buffered input rows
    o_b = 2 * tm * d_model * it(out_dtype)        # double-buffered output rows
    w_b = 2 * 2 * d_model * tf * it(w_dtype)      # W1 + W2 slices, 2 buffers
    v_b = 2 * (tf + 3 * d_model) * 4              # bias / gamma / beta rows
    acc = tm * d_model * 4                        # f32 accumulator scratch
    h_b = 2 * tm * tf * 4                         # f32 intermediate h (rough)
    return x_b + o_b + w_b + v_b + acc + h_b


# ---------------------------------------------------------------------------
# Wrapper
# ---------------------------------------------------------------------------
def ffn_layer_pallas(tgt, params, *, eps=1e-5, tm=256, tf=None):
    """forward_post of FFNLayer.  tgt: (seq, batch, d_model); params from
    prepare_ffn_params.  Returns (seq, batch, d_model) in tgt.dtype."""
    seq, batch, d_model = tgt.shape
    w1, b1 = params["w1"], params["b1"]
    w2, b2 = params["w2"], params["b2"]
    gamma, beta = params["gamma"], params["beta"]
    dim_ff = w1.shape[1]
    assert w1.shape == (d_model, dim_ff) and w2.shape == (dim_ff, d_model)

    n = seq * batch
    x = tgt.reshape(n, d_model)

    # Row tile: sublane-aligned, large, but capped so the row grid keeps >= 4
    # steps when possible (each v7x TensorCore still gets >= 2 steps so its
    # x / out DMAs overlap compute).  Ragged tail rows are left to Pallas
    # boundary masking (row-wise op: garbage tail rows only hit discarded rows).
    sub = _sublane(tgt.dtype)
    tm = _round_up(max(tm, sub), sub)
    tm_eff = max(sub, min(tm, _round_up(pl.cdiv(n, 4), sub)))
    grid_rows = pl.cdiv(n, tm_eff)

    # Hidden tile: resident weights when they fit ~half the VMEM budget,
    # otherwise stream dim_ff over an "arbitrary" grid axis.
    w_itemsize = jnp.dtype(w1.dtype).itemsize
    if tf is None:
        tf = _pick_hidden_tile(d_model, dim_ff, w_itemsize, _VMEM_TARGET // 2)
    assert dim_ff % tf == 0, "hidden tile must divide dim_feedforward exactly"
    nf = dim_ff // tf

    vmem_limit = int(min(
        _VMEM_CAP,
        _vmem_bytes(tm_eff, d_model, tf, tgt.dtype, tgt.dtype, w1.dtype)
        + 16 * 1024 * 1024))                       # headroom for Mosaic scratch

    io_bytes = jnp.dtype(tgt.dtype).itemsize
    w_reads = grid_rows if nf > 1 else 1           # streamed W re-read per row block
    cost = pl.CostEstimate(
        flops=4 * n * d_model * dim_ff + 10 * n * d_model,
        transcendentals=n,
        bytes_accessed=int(2 * n * d_model * io_bytes
                           + w_reads * 2 * d_model * dim_ff * w_itemsize),
    )

    def _build(single_buffer_consts):
        def const_spec(shape):
            if single_buffer_consts:
                return pl.BlockSpec(shape, lambda i, k: (0, 0),
                                    pipeline_mode=pl.Buffered(1))
            return pl.BlockSpec(shape, lambda i, k: (0, 0))

        if nf == 1:   # fully resident weights -> constant block indices
            w1_spec = const_spec((d_model, tf))
            b1_spec = const_spec((1, tf))
            w2_spec = const_spec((tf, d_model))
        else:         # stream hidden slices (double-buffered behind the MXU)
            w1_spec = pl.BlockSpec((d_model, tf), lambda i, k: (0, k))
            b1_spec = pl.BlockSpec((1, tf), lambda i, k: (0, k))
            w2_spec = pl.BlockSpec((tf, d_model), lambda i, k: (k, 0))

        grid_spec = pltpu.PrefetchScalarGridSpec(
            num_scalar_prefetch=0,
            grid=(grid_rows, nf),
            in_specs=[
                pl.BlockSpec((tm_eff, d_model), lambda i, k: (i, 0)),   # x rows
                w1_spec, b1_spec, w2_spec,
                const_spec((1, d_model)),                               # b2
                const_spec((1, d_model)),                               # gamma
                const_spec((1, d_model)),                               # beta
            ],
            out_specs=pl.BlockSpec((tm_eff, d_model), lambda i, k: (i, 0)),
            scratch_shapes=[pltpu.VMEM((tm_eff, d_model), jnp.float32)],
        )
        return pl.pallas_call(
            functools.partial(_ffn_kernel, eps=eps),
            out_shape=jax.ShapeDtypeStruct((n, d_model), tgt.dtype),
            grid_spec=grid_spec,
            compiler_params=pltpu.CompilerParams(
                dimension_semantics=("parallel", "arbitrary"),
                vmem_limit_bytes=vmem_limit),
            cost_estimate=cost,
        )

    args = (x, w1, b1, w2, b2, gamma, beta)
    if nf == 1:
        try:
            out = jax.block_until_ready(_build(True)(*args))
        except Exception:
            # pipeline_mode=pl.Buffered(1) unsupported on this jax build:
            # fall back to default double-buffered constant blocks (correct,
            # just slightly more VMEM).
            out = _build(False)(*args)
    else:
        out = _build(False)(*args)

    return out.reshape(seq, batch, d_model)


# ---------------------------------------------------------------------------
# Reference + demo
# ---------------------------------------------------------------------------
def ffn_layer_ref(tgt, w1, b1, w2, b2, gamma, beta, eps=1e-5):
    x = tgt.astype(jnp.float32)
    h = jnp.maximum(x @ w1.astype(jnp.float32) + b1, 0.0)
    y = h @ w2.astype(jnp.float32) + b2
    z = x + y
    mean = jnp.mean(z, axis=-1, keepdims=True)
    var = jnp.mean((z - mean) ** 2, axis=-1, keepdims=True)
    return ((z - mean) * lax.rsqrt(var + eps) * gamma + beta).astype(tgt.dtype)


def _xavier_uniform(key, shape, dtype=jnp.float32):
    fan_in, fan_out = shape
    limit = (6.0 / (fan_in + fan_out)) ** 0.5
    return jax.random.uniform(key, shape, dtype, minval=-limit, maxval=limit)


def _make_case(key, seq, batch, d_model, dim_ff):
    ks = jax.random.split(key, 7)
    tgt = jax.random.normal(ks[0], (seq, batch, d_model), jnp.float32)
    w1 = _xavier_uniform(ks[1], (d_model, dim_ff))            # linear1.weight^T
    b1 = jax.random.uniform(ks[2], (dim_ff,), jnp.float32,
                            minval=-d_model ** -0.5, maxval=d_model ** -0.5)
    w2 = _xavier_uniform(ks[3], (dim_ff, d_model))            # linear2.weight^T
    b2 = jax.random.uniform(ks[4], (d_model,), jnp.float32,
                            minval=-dim_ff ** -0.5, maxval=dim_ff ** -0.5)
    gamma = 1.0 + 0.1 * jax.random.normal(ks[5], (d_model,), jnp.float32)
    beta = 0.1 * jax.random.normal(ks[6], (d_model,), jnp.float32)
    return tgt, (w1, b1, w2, b2, gamma, beta)


if __name__ == "__main__":
    key = jax.random.PRNGKey(0)
    k1, k2 = jax.random.split(key)

    # Case 1: module-like small shapes (queries = (seq, batch, d_model));
    # resident weights, bf16 MXU matmuls, ragged last row block (n=18, tm=8).
    tgt, raw = _make_case(k1, seq=9, batch=2, d_model=32, dim_ff=64)
    params = prepare_ffn_params(*raw, matmul_dtype=jnp.bfloat16)
    out = jax.block_until_ready(ffn_layer_pallas(tgt, params))
    ref = ffn_layer_ref(tgt, *raw)
    assert out.shape == tgt.shape and out.dtype == tgt.dtype
    assert jnp.allclose(out, ref, atol=3e-2, rtol=3e-2), "case1 mismatch vs reference"

    # Case 2: hidden dimension streamed over the "arbitrary" grid axis
    # (tf=128, 2 f-steps) — validates the accumulator / finalize structure.
    tgt2, raw2 = _make_case(k2, seq=4, batch=2, d_model=128, dim_ff=256)
    params2 = prepare_ffn_params(*raw2, matmul_dtype=jnp.float32)
    out2 = jax.block_until_ready(ffn_layer_pallas(tgt2, params2, tf=128))
    ref2 = ffn_layer_ref(tgt2, *raw2)
    assert jnp.allclose(out2, ref2, atol=3e-2, rtol=3e-2), "case2 mismatch vs reference"

    print("KERNEL_OK")
</pallas_src>

<mosaic_0001>
module attributes {stable_mosaic.version = 11 : i64} {
  func.func @_ffn_kernel(%arg0: i32, %arg1: i32, %arg2: memref<8x32xf32, #tpu.memory_space<vmem>>, %arg3: memref<32x64xbf16, #tpu.memory_space<vmem>>, %arg4: memref<1x64xf32, #tpu.memory_space<vmem>>, %arg5: memref<64x32xbf16, #tpu.memory_space<vmem>>, %arg6: memref<1x32xf32, #tpu.memory_space<vmem>>, %arg7: memref<1x32xf32, #tpu.memory_space<vmem>>, %arg8: memref<1x32xf32, #tpu.memory_space<vmem>>, %arg9: memref<8x32xf32, #tpu.memory_space<vmem>>, %arg10: memref<8x32xf32, #tpu.memory_space<vmem>>) attributes {dimension_semantics = [#tpu.dimension_semantics<parallel>, #tpu.dimension_semantics<arbitrary>], iteration_bounds = array<i64: 3, 1>, scalar_prefetch = 0 : i64, scratch_operands = 1 : i64, tpu.core_type = #tpu.core_type<tc>, window_params = [{transform_indices = @transform_0, window_bounds = array<i64: 8, 32>}, {pipeline_mode = #tpu.pipeline_mode<synchronous>, transform_indices = @transform_1, window_bounds = array<i64: 32, 64>}, {pipeline_mode = #tpu.pipeline_mode<synchronous>, transform_indices = @transform_2, window_bounds = array<i64: 1, 64>}, {pipeline_mode = #tpu.pipeline_mode<synchronous>, transform_indices = @transform_3, window_bounds = array<i64: 64, 32>}, {pipeline_mode = #tpu.pipeline_mode<synchronous>, transform_indices = @transform_4, window_bounds = array<i64: 1, 32>}, {pipeline_mode = #tpu.pipeline_mode<synchronous>, transform_indices = @transform_5, window_bounds = array<i64: 1, 32>}, {pipeline_mode = #tpu.pipeline_mode<synchronous>, transform_indices = @transform_6, window_bounds = array<i64: 1, 32>}, {transform_indices = @transform_7, window_bounds = array<i64: 8, 32>}]} {
    %c0_i32 = arith.constant 0 : i32
    %0 = arith.cmpi eq, %arg1, %c0_i32 : i32
    %1 = arith.extui %0 : i1 to i32
    %c0_i32_0 = arith.constant 0 : i32
    %2 = arith.cmpi ne, %1, %c0_i32_0 : i32
    scf.if %2 {
      %cst_16 = arith.constant 0.000000e+00 : f32
      %21 = vector.broadcast %cst_16 : f32 to vector<8x32xf32>
      %c0_17 = arith.constant 0 : index
      %c0_18 = arith.constant 0 : index
      %22 = vector.load %arg10[%c0_17, %c0_18] : memref<8x32xf32, #tpu.memory_space<vmem>>, vector<8x32xf32>
      tpu.vector_store %arg10[%c0_17, %c0_18], %21 {strides = array<i32>} : memref<8x32xf32, #tpu.memory_space<vmem>>, vector<8x32xf32>,
    } else {
    }
    %c0 = arith.constant 0 : index
    %c0_1 = arith.constant 0 : index
    %3 = vector.load %arg2[%c0, %c0_1] : memref<8x32xf32, #tpu.memory_space<vmem>>, vector<8x32xf32>
    %4 = arith.truncf %3 : vector<8x32xf32> to vector<8x32xbf16>
    %c0_2 = arith.constant 0 : index
    %c0_3 = arith.constant 0 : index
    %5 = vector.load %arg3[%c0_2, %c0_3] : memref<32x64xbf16, #tpu.memory_space<vmem>>, vector<32x64xbf16>
    %cst = arith.constant dense<0.000000e+00> : vector<8x64xf32>
    %6 = tpu.matmul %4, %5, %cst {dimension_numbers = #tpu.dot_dimension_numbers<[1], [0], [0], [1], [0, 0, 1, 1], [], []>} : vector<8x32xbf16>, vector<32x64xbf16>, vector<8x64xf32> -> vector<8x64xf32>
    %c0_4 = arith.constant 0 : index
    %c0_5 = arith.constant 0 : index
    %7 = vector.load %arg4[%c0_4, %c0_5] : memref<1x64xf32, #tpu.memory_space<vmem>>, vector<1x64xf32>
    %8 = vector.broadcast %7 : vector<1x64xf32> to vector<8x64xf32>
    %9 = arith.addf %6, %8 : vector<8x64xf32>
    %cst_6 = arith.constant 0.000000e+00 : f32
    %10 = vector.broadcast %cst_6 : f32 to vector<8x64xf32>
    %11 = arith.maximumf %9, %10 : vector<8x64xf32>
    %c0_7 = arith.constant 0 : index
    %c0_8 = arith.constant 0 : index
    %12 = vector.load %arg10[%c0_7, %c0_8] : memref<8x32xf32, #tpu.memory_space<vmem>>, vector<8x32xf32>
    %13 = arith.truncf %11 : vector<8x64xf32> to vector<8x64xbf16>
    %c0_9 = arith.constant 0 : index
    %c0_10 = arith.constant 0 : index
    %14 = vector.load %arg5[%c0_9, %c0_10] : memref<64x32xbf16, #tpu.memory_space<vmem>>, vector<64x32xbf16>
    %cst_11 = arith.constant dense<0.000000e+00> : vector<8x32xf32>
    %15 = tpu.matmul %13, %14, %cst_11 {dimension_numbers = #tpu.dot_dimension_numbers<[1], [0], [0], [1], [0, 0, 1, 1], [], []>} : vector<8x64xbf16>, vector<64x32xbf16>, vector<8x32xf32> -> vector<8x32xf32>
    %16 = arith.addf %12, %15 : vector<8x32xf32>
    %c0_12 = arith.constant 0 : index
    %c0_13 = arith.constant 0 : index
    %17 = vector.load %arg10[%c0_12, %c0_13] : memref<8x32xf32, #tpu.memory_space<vmem>>, vector<8x32xf32>
    tpu.vector_store %arg10[%c0_12, %c0_13], %16 {strides = array<i32>} : memref<8x32xf32, #tpu.memory_space<vmem>>, vector<8x32xf32>,
    %c0_i32_14 = arith.constant 0 : i32
    %18 = arith.cmpi eq, %arg1, %c0_i32_14 : i32
    %19 = arith.extui %18 : i1 to i32
    %c0_i32_15 = arith.constant 0 : i32
    %20 = arith.cmpi ne, %19, %c0_i32_15 : i32
    scf.if %20 {
      %c0_16 = arith.constant 0 : index
      %c0_17 = arith.constant 0 : index
      %21 = vector.load %arg10[%c0_16, %c0_17] : memref<8x32xf32, #tpu.memory_space<vmem>>, vector<8x32xf32>
      %22 = arith.addf %3, %21 : vector<8x32xf32>
      %c0_18 = arith.constant 0 : index
      %c0_19 = arith.constant 0 : index
      %23 = vector.load %arg6[%c0_18, %c0_19] : memref<1x32xf32, #tpu.memory_space<vmem>>, vector<1x32xf32>
      %24 = vector.broadcast %23 : vector<1x32xf32> to vector<8x32xf32>
      %25 = arith.addf %22, %24 : vector<8x32xf32>
      %cst_20 = arith.constant dense<0.000000e+00> : vector<8xf32>
      %26 = vector.multi_reduction <add>, %25, %cst_20 [1] : vector<8x32xf32> to vector<8xf32>
      %27 = vector.shape_cast %26 : vector<8xf32> to vector<8x1xf32>
      %cst_21 = arith.constant 3.200000e+01 : f32
      %28 = vector.broadcast %cst_21 : f32 to vector<8x1xf32>
      %29 = arith.divf %27, %28 : vector<8x1xf32>
      %30 = vector.broadcast %29 : vector<8x1xf32> to vector<8x32xf32>
      %31 = arith.subf %25, %30 : vector<8x32xf32>
      %32 = arith.mulf %31, %31 : vector<8x32xf32>
      %cst_22 = arith.constant dense<0.000000e+00> : vector<8xf32>
      %33 = vector.multi_reduction <add>, %32, %cst_22 [1] : vector<8x32xf32> to vector<8xf32>
      %34 = vector.shape_cast %33 : vector<8xf32> to vector<8x1xf32>
      %cst_23 = arith.constant 3.200000e+01 : f32
      %35 = vector.broadcast %cst_23 : f32 to vector<8x1xf32>
      %36 = arith.divf %34, %35 : vector<8x1xf32>
      %cst_24 = arith.constant 9.99999974E-6 : f32
      %37 = vector.broadcast %cst_24 : f32 to vector<8x1xf32>
      %38 = arith.addf %36, %37 : vector<8x1xf32>
      %39 = math.rsqrt %38 : vector<8x1xf32>
      %40 = vector.broadcast %39 : vector<8x1xf32> to vector<8x32xf32>
      %41 = arith.mulf %31, %40 : vector<8x32xf32>
      %c0_25 = arith.constant 0 : index
      %c0_26 = arith.constant 0 : index
      %42 = vector.load %arg7[%c0_25, %c0_26] : memref<1x32xf32, #tpu.memory_space<vmem>>, vector<1x32xf32>
      %43 = vector.broadcast %42 : vector<1x32xf32> to vector<8x32xf32>
      %44 = arith.mulf %41, %43 : vector<8x32xf32>
      %c0_27 = arith.constant 0 : index
      %c0_28 = arith.constant 0 : index
      %45 = vector.load %arg8[%c0_27, %c0_28] : memref<1x32xf32, #tpu.memory_space<vmem>>, vector<1x32xf32>
      %46 = vector.broadcast %45 : vector<1x32xf32> to vector<8x32xf32>
      %47 = arith.addf %44, %46 : vector<8x32xf32>
      %c0_29 = arith.constant 0 : index
      %c0_30 = arith.constant 0 : index
      %48 = vector.load %arg9[%c0_29, %c0_30] : memref<8x32xf32, #tpu.memory_space<vmem>>, vector<8x32xf32>
      tpu.vector_store %arg9[%c0_29, %c0_30], %47 {strides = array<i32>} : memref<8x32xf32, #tpu.memory_space<vmem>>, vector<8x32xf32>,
    } else {
    }
    return
  }
  func.func @transform_0(%arg0: i32, %arg1: i32) -> (i32, i32) {
    %c0_i32 = arith.constant 0 : i32
    %c0_i32_0 = arith.constant 0 : i32
    return %arg0, %c0_i32 : i32, i32
  }
  func.func @transform_1(%arg0: i32, %arg1: i32) -> (i32, i32) {
    %c0_i32 = arith.constant 0 : i32
    %c0_i32_0 = arith.constant 0 : i32
    %c0_i32_1 = arith.constant 0 : i32
    return %c0_i32, %c0_i32_0 : i32, i32
  }
  func.func @transform_2(%arg0: i32, %arg1: i32) -> (i32, i32) {
    %c0_i32 = arith.constant 0 : i32
    %c0_i32_0 = arith.constant 0 : i32
    %c0_i32_1 = arith.constant 0 : i32
    return %c0_i32, %c0_i32_0 : i32, i32
  }
  func.func @transform_3(%arg0: i32, %arg1: i32) -> (i32, i32) {
    %c0_i32 = arith.constant 0 : i32
    %c0_i32_0 = arith.constant 0 : i32
    %c0_i32_1 = arith.constant 0 : i32
    return %c0_i32, %c0_i32_0 : i32, i32
  }
  func.func @transform_4(%arg0: i32, %arg1: i32) -> (i32, i32) {
    %c0_i32 = arith.constant 0 : i32
    %c0_i32_0 = arith.constant 0 : i32
    %c0_i32_1 = arith.constant 0 : i32
    return %c0_i32, %c0_i32_0 : i32, i32
  }
  func.func @transform_5(%arg0: i32, %arg1: i32) -> (i32, i32) {
    %c0_i32 = arith.constant 0 : i32
    %c0_i32_0 = arith.constant 0 : i32
    %c0_i32_1 = arith.constant 0 : i32
    return %c0_i32, %c0_i32_0 : i32, i32
  }
  func.func @transform_6(%arg0: i32, %arg1: i32) -> (i32, i32) {
    %c0_i32 = arith.constant 0 : i32
    %c0_i32_0 = arith.constant 0 : i32
    %c0_i32_1 = arith.constant 0 : i32
    return %c0_i32, %c0_i32_0 : i32, i32
  }
  func.func @transform_7(%arg0: i32, %arg1: i32) -> (i32, i32) {
    %c0_i32 = arith.constant 0 : i32
    %c0_i32_0 = arith.constant 0 : i32
    return %arg0, %c0_i32 : i32, i32
  }
}

module attributes {stable_mosaic.version = 11 : i64} {
  func.func @_ffn_kernel(%arg0: i32, %arg1: i32, %arg2: memref<8x32xf32, #tpu.memory_space<vmem>>, %arg3: memref<32x64xbf16, #tpu.memory_space<vmem>>, %arg4: memref<1x64xf32, #tpu.memory_space<vmem>>, %arg5: memref<64x32xbf16, #tpu.memory_space<vmem>>, %arg6: memref<1x32xf32, #tpu.memory_space<vmem>>, %arg7: memref<1x32xf32, #tpu.memory_space<vmem>>, %arg8: memref<1x32xf32, #tpu.memory_space<vmem>>, %arg9: memref<8x32xf32, #tpu.memory_space<vmem>>, %arg10: memref<8x32xf32, #tpu.memory_space<vmem>>) attributes {dimension_semantics = [#tpu.dimension_semantics<parallel>, #tpu.dimension_semantics<arbitrary>], iteration_bounds = array<i64: 3, 1>, scalar_prefetch = 0 : i64, scratch_operands = 1 : i64, tpu.core_type = #tpu.core_type<tc>, window_params = [{transform_indices = @transform_0, window_bounds = array<i64: 8, 32>}, {pipeline_mode = #tpu.pipeline_mode<synchronous>, transform_indices = @transform_1, window_bounds = array<i64: 32, 64>}, {pipeline_mode = #tpu.pipeline_mode<synchronous>, transform_indices = @transform_2, window_bounds = array<i64: 1, 64>}, {pipeline_mode = #tpu.pipeline_mode<synchronous>, transform_indices = @transform_3, window_bounds = array<i64: 64, 32>}, {pipeline_mode = #tpu.pipeline_mode<synchronous>, transform_indices = @transform_4, window_bounds = array<i64: 1, 32>}, {pipeline_mode = #tpu.pipeline_mode<synchronous>, transform_indices = @transform_5, window_bounds = array<i64: 1, 32>}, {pipeline_mode = #tpu.pipeline_mode<synchronous>, transform_indices = @transform_6, window_bounds = array<i64: 1, 32>}, {transform_indices = @transform_7, window_bounds = array<i64: 8, 32>}]} {
    %c0_i32 = arith.constant 0 : i32
    %0 = arith.cmpi eq, %arg1, %c0_i32 : i32
    %1 = arith.extui %0 : i1 to i32
    %c0_i32_0 = arith.constant 0 : i32
    %2 = arith.cmpi ne, %1, %c0_i32_0 : i32
    scf.if %2 {
      %cst_16 = arith.constant 0.000000e+00 : f32
      %21 = vector.broadcast %cst_16 : f32 to vector<8x32xf32>
      %c0_17 = arith.constant 0 : index
      %c0_18 = arith.constant 0 : index
      %22 = vector.load %arg10[%c0_17, %c0_18] : memref<8x32xf32, #tpu.memory_space<vmem>>, vector<8x32xf32>
      tpu.vector_store %arg10[%c0_17, %c0_18], %21 {strides = array<i32>} : memref<8x32xf32, #tpu.memory_space<vmem>>, vector<8x32xf32>,
    } else {
    }
    %c0 = arith.constant 0 : index
    %c0_1 = arith.constant 0 : index
    %3 = vector.load %arg2[%c0, %c0_1] : memref<8x32xf32, #tpu.memory_space<vmem>>, vector<8x32xf32>
    %4 = arith.truncf %3 : vector<8x32xf32> to vector<8x32xbf16>
    %c0_2 = arith.constant 0 : index
    %c0_3 = arith.constant 0 : index
    %5 = vector.load %arg3[%c0_2, %c0_3] : memref<32x64xbf16, #tpu.memory_space<vmem>>, vector<32x64xbf16>
    %cst = arith.constant dense<0.000000e+00> : vector<8x64xf32>
    %6 = tpu.matmul %4, %5, %cst {dimension_numbers = #tpu.dot_dimension_numbers<[1], [0], [0], [1], [0, 0, 1, 1], [], []>} : vector<8x32xbf16>, vector<32x64xbf16>, vector<8x64xf32> -> vector<8x64xf32>
    %c0_4 = arith.constant 0 : index
    %c0_5 = arith.constant 0 : index
    %7 = vector.load %arg4[%c0_4, %c0_5] : memref<1x64xf32, #tpu.memory_space<vmem>>, vector<1x64xf32>
    %8 = vector.broadcast %7 : vector<1x64xf32> to vector<8x64xf32>
    %9 = arith.addf %6, %8 : vector<8x64xf32>
    %cst_6 = arith.constant 0.000000e+00 : f32
    %10 = vector.broadcast %cst_6 : f32 to vector<8x64xf32>
    %11 = arith.maximumf %9, %10 : vector<8x64xf32>
    %c0_7 = arith.constant 0 : index
    %c0_8 = arith.constant 0 : index
    %12 = vector.load %arg10[%c0_7, %c0_8] : memref<8x32xf32, #tpu.memory_space<vmem>>, vector<8x32xf32>
    %13 = arith.truncf %11 : vector<8x64xf32> to vector<8x64xbf16>
    %c0_9 = arith.constant 0 : index
    %c0_10 = arith.constant 0 : index
    %14 = vector.load %arg5[%c0_9, %c0_10] : memref<64x32xbf16, #tpu.memory_space<vmem>>, vector<64x32xbf16>
    %cst_11 = arith.constant dense<0.000000e+00> : vector<8x32xf32>
    %15 = tpu.matmul %13, %14, %cst_11 {dimension_numbers = #tpu.dot_dimension_numbers<[1], [0], [0], [1], [0, 0, 1, 1], [], []>} : vector<8x64xbf16>, vector<64x32xbf16>, vector<8x32xf32> -> vector<8x32xf32>
    %16 = arith.addf %12, %15 : vector<8x32xf32>
    %c0_12 = arith.constant 0 : index
    %c0_13 = arith.constant 0 : index
    %17 = vector.load %arg10[%c0_12, %c0_13] : memref<8x32xf32, #tpu.memory_space<vmem>>, vector<8x32xf32>
    tpu.vector_store %arg10[%c0_12, %c0_13], %16 {strides = array<i32>} : memref<8x32xf32, #tpu.memory_space<vmem>>, vector<8x32xf32>,
    %c0_i32_14 = arith.constant 0 : i32
    %18 = arith.cmpi eq, %arg1, %c0_i32_14 : i32
    %19 = arith.extui %18 : i1 to i32
    %c0_i32_15 = arith.constant 0 : i32
    %20 = arith.cmpi ne, %19, %c0_i32_15 : i32
    scf.if %20 {
      %c0_16 = arith.constant 0 : index
      %c0_17 = arith.constant 0 : index
      %21 = vector.load %arg10[%c0_16, %c0_17] : memref<8x32xf32, #tpu.memory_space<vmem>>, vector<8x32xf32>
      %22 = arith.addf %3, %21 : vector<8x32xf32>
      %c0_18 = arith.constant 0 : index
      %c0_19 = arith.constant 0 : index
      %23 = vector.load %arg6[%c0_18, %c0_19] : memref<1x32xf32, #tpu.memory_space<vmem>>, vector<1x32xf32>
      %24 = vector.broadcast %23 : vector<1x32xf32> to vector<8x32xf32>
      %25 = arith.addf %22, %24 : vector<8x32xf32>
      %cst_20 = arith.constant dense<0.000000e+00> : vector<8xf32>
      %26 = vector.multi_reduction <add>, %25, %cst_20 [1] : vector<8x32xf32> to vector<8xf32>
      %27 = vector.shape_cast %26 : vector<8xf32> to vector<8x1xf32>
      %cst_21 = arith.constant 3.200000e+01 : f32
      %28 = vector.broadcast %cst_21 : f32 to vector<8x1xf32>
      %29 = arith.divf %27, %28 : vector<8x1xf32>
      %30 = vector.broadcast %29 : vector<8x1xf32> to vector<8x32xf32>
      %31 = arith.subf %25, %30 : vector<8x32xf32>
      %32 = arith.mulf %31, %31 : vector<8x32xf32>
      %cst_22 = arith.constant dense<0.000000e+00> : vector<8xf32>
      %33 = vector.multi_reduction <add>, %32, %cst_22 [1] : vector<8x32xf32> to vector<8xf32>
      %34 = vector.shape_cast %33 : vector<8xf32> to vector<8x1xf32>
      %cst_23 = arith.constant 3.200000e+01 : f32
      %35 = vector.broadcast %cst_23 : f32 to vector<8x1xf32>
      %36 = arith.divf %34, %35 : vector<8x1xf32>
      %cst_24 = arith.constant 9.99999974E-6 : f32
      %37 = vector.broadcast %cst_24 : f32 to vector<8x1xf32>
      %38 = arith.addf %36, %37 : vector<8x1xf32>
      %39 = math.rsqrt %38 : vector<8x1xf32>
      %40 = vector.broadcast %39 : vector<8x1xf32> to vector<8x32xf32>
      %41 = arith.mulf %31, %40 : vector<8x32xf32>
      %c0_25 = arith.constant 0 : index
      %c0_26 = arith.constant 0 : index
      %42 = vector.load %arg7[%c0_25, %c0_26] : memref<1x32xf32, #tpu.memory_space<vmem>>, vector<1x32xf32>
      %43 = vector.broadcast %42 : vector<1x32xf32> to vector<8x32xf32>
      %44 = arith.mulf %41, %43 : vector<8x32xf32>
      %c0_27 = arith.constant 0 : index
      %c0_28 = arith.constant 0 : index
      %45 = vector.load %arg8[%c0_27, %c0_28] : memref<1x32xf32, #tpu.memory_space<vmem>>, vector<1x32xf32>
      %46 = vector.broadcast %45 : vector<1x32xf32> to vector<8x32xf32>
      %47 = arith.addf %44, %46 : vector<8x32xf32>
      %c0_29 = arith.constant 0 : index
      %c0_30 = arith.constant 0 : index
      %48 = vector.load %arg9[%c0_29, %c0_30] : memref<8x32xf32, #tpu.memory_space<vmem>>, vector<8x32xf32>
      tpu.vector_store %arg9[%c0_29, %c0_30], %47 {strides = array<i32>} : memref<8x32xf32, #tpu.memory_space<vmem>>, vector<8x32xf32>,
    } else {
    }
    return
  }
  func.func @transform_0(%arg0: i32, %arg1: i32) -> (i32, i32) {
    %c0_i32 = arith.constant 0 : i32
    %c0_i32_0 = arith.constant 0 : i32
    return %arg0, %c0_i32 : i32, i32
  }
  func.func @transform_1(%arg0: i32, %arg1: i32) -> (i32, i32) {
    %c0_i32 = arith.constant 0 : i32
    %c0_i32_0 = arith.constant 0 : i32
    %c0_i32_1 = arith.constant 0 : i32
    return %c0_i32, %c0_i32_0 : i32, i32
  }
  func.func @transform_2(%arg0: i32, %arg1: i32) -> (i32, i32) {
    %c0_i32 = arith.constant 0 : i32
    %c0_i32_0 = arith.constant 0 : i32
    %c0_i32_1 = arith.constant 0 : i32
    return %c0_i32, %c0_i32_0 : i32, i32
  }
  func.func @transform_3(%arg0: i32, %arg1: i32) -> (i32, i32) {
    %c0_i32 = arith.constant 0 : i32
    %c0_i32_0 = arith.constant 0 : i32
    %c0_i32_1 = arith.constant 0 : i32
    return %c0_i32, %c0_i32_0 : i32, i32
  }
  func.func @transform_4(%arg0: i32, %arg1: i32) -> (i32, i32) {
    %c0_i32 = arith.constant 0 : i32
    %c0_i32_0 = arith.constant 0 : i32
    %c0_i32_1 = arith.constant 0 : i32
    return %c0_i32, %c0_i32_0 : i32, i32
  }
  func.func @transform_5(%arg0: i32, %arg1: i32) -> (i32, i32) {
    %c0_i32 = arith.constant 0 : i32
    %c0_i32_0 = arith.constant 0 : i32
    %c0_i32_1 = arith.constant 0 : i32
    return %c0_i32, %c0_i32_0 : i32, i32
  }
  func.func @transform_6(%arg0: i32, %arg1: i32) -> (i32, i32) {
    %c0_i32 = arith.constant 0 : i32
    %c0_i32_0 = arith.constant 0 : i32
    %c0_i32_1 = arith.constant 0 : i32
    return %c0_i32, %c0_i32_0 : i32, i32
  }
  func.func @transform_7(%arg0: i32, %arg1: i32) -> (i32, i32) {
    %c0_i32 = arith.constant 0 : i32
    %c0_i32_0 = arith.constant 0 : i32
    return %arg0, %c0_i32 : i32, i32
  }
}

</mosaic_0001>

<bundles_post_ra>
// kernel: tpu_custom_call.1
= control target key start
LH: loop header
LB: loop body
LE: loop exit
PB: predicated region body
PF: predicated region fallthrough
CT: control target
= control target key end

     0   :  { %12 = vsyncpa [#allocation4], 0  ;;  %s955_s0 = inlined_call_operand.vmem [shape: f32[18,32], index: 0, kind: input, shape index: {}]   ;;  %s956_s1 = inlined_call_operand.vmem [shape: bf16[32,64], index: 1, kind: input, shape index: {}]   ;;  %s957_s2 = inlined_call_operand.vmem [shape: f32[1,64], index: 2, kind: input, shape index: {}]   ;;  %s958_s3 = inlined_call_operand.vmem [shape: bf16[64,32], index: 3, kind: input, shape index: {}]   ;;  %s959_s4 = inlined_call_operand.vmem [shape: f32[1,32], index: 4, kind: input, shape index: {}]   ;;  %s960_s5 = inlined_call_operand.vmem [shape: f32[1,32], index: 5, kind: input, shape index: {}]   ;;  %s961_s6 = inlined_call_operand.vmem [shape: f32[1,32], index: 6, kind: input, shape index: {}]   ;;  %s962_s7 = inlined_call_operand.hbm [shape: f32[18,32], index: 7, kind: output, shape index: {}]  }
   0x1   :  { %14 = vsyncpa [#allocation4 + $0x1], 0  ;;  %s807_s24 = smov 0   ;;  %s809_s25 = smov 0  }
   0x2   :  { %s811_s26 = smov 0   ;;  %s813_s27 = smov 0  }
   0x3   :  { %s815_s28 = smov 0   ;;  %s817_s29 = smov 0  }
   0x4 LB: > { %s568_s30 = sadd.s32 4294967295, %s762_s29   ;;  %s569_s8 = sadd.s32 4294967294, %s762_s29   ;;  %s762_s29 = sphi %s817_s29, %s20_s29   ;;  %s758_s28 = sphi %s815_s28, %s969_s28   ;;  %s754_s27 = sphi %s813_s27, %s968_s27   ;;  %s750_s26 = sphi %s811_s26, %s967_s26   ;;  %s746_s25 = sphi %s809_s25, %s966_s25   ;;  %s742_s24 = sphi %s807_s24, %s965_s24  }
   0x5   : > { %s32_s9 = sadd.s32 1, %s758_s28  ;;  %s191_s10 = sadd.s32 1, %s750_s26 }
   0x6   : > { %p34_p0 = scmp.ge.s32.totalorder %s32_s9, 3  ;;  %p201_p1 = scmp.ne.s32.totalorder %s750_s26, %s746_s25 }
   0x7   : > { %p202_p2 = scmp.eq.s32.totalorder %s568_s30, 2  ;;  %p207_p3 = scmp.ne.s32.totalorder %s746_s25, %s742_s24 }
   0x8   : > { %s971_s9 = smov (%p34_p0, %s32_s9), 0  ;;  %p208_p5 = scmp.eq.s32.totalorder %s569_s8, 2 }
   0x9   : > { %p847_p4 = por %p202_p2, %p201_p1  ;;  %s188_s12 = ssub.s32 %s758_s28, %s971_s9 }
   0xa   : > { %p572_p6 = scmp.ge.s32.totalorder %s762_s29, 1  ;;  %p189_p7 = scmp.eq.s32.totalorder %s188_s12, 0 }
   0xb   : > { %p854_p8 = por %p208_p5, %p207_p3  ;;  %p251_p9 = scmp.lt.s32.totalorder %s762_s29, 4 }
   0xc   : > { %s860_s14 = scalar_select %p189_p7, %s750_s26, %s191_s10  }
   0xd   : > { %p252_p10 = pnand %p572_p6, %p251_p9 }
   0xe   : > { %v676_v0 = vld [vmem:[%s956_s1] sm:$0xff] (!%p252_p10)   ;;  %v764_v1 = vmov (!%p252_p10), 0.0   ;;  %v677_v2 = vld [vmem:[%s956_s1 + $0x8] sm:$0xff] (!%p252_p10)   ;;  %vm765_vm0 = vmmov (!%p252_p10), 0   ;;  %p282_p11 = scmp.lt.s32.totalorder (!%p252_p10), %s754_s27, 2  ;;  %vm291_vm1 = vcmask (!%p252_p10), 261120  }
   0xf   : > { %255 = sbr.rel (%p252_p10) target bundleno = 800 (0x320), region = 48  ;;  %599 = vmatprep.subr.bf16.mxu0 (!%p252_p10), %v764_v1  ;;  %607 = vmatprep.subr.bf16.mxu1 (!%p252_p10), %v764_v1  ;;  %292 = vst.msk [vmem:[#allocation2] sm:$0xff] (!%p252_p10), %vm291_vm1, %v764_v1  ;;  %v678_v3 = vld [vmem:[%s958_s3] sm:$0xff] (!%p252_p10)   ;;  %v679_v4 = vld [vmem:[%s958_s3 + $0x8] sm:$0xff] (!%p252_p10)   ;;  %v680_v7 = vld [vmem:[%s958_s3 + $0x10] sm:$0xff] (!%p252_p10)   ;;  %vm397_vm2 = vcmask (!%p252_p10), 523264  }
  0x10   : > { %600 = vmatpush3.bf16.msra.mxu0 (!%p252_p10), %v676_v0  ;;  %603 = vmatprep.mubr.msk.bf16.mxu0 (!%p252_p10), %vm765_vm0, %v764_v1  ;;  %v681_v8 = vld [vmem:[%s958_s3 + $0x18] sm:$0xff] (!%p252_p10)   ;;  %v575_v9 = vld [vmem:[%s957_s2] ss:$0 sm:$0xff] (!%p252_p10)  ;;  %s279_s23 = sand.u32 (!%p252_p10), 1, %s746_s25   ;;  %s588_s16 = sshll.u32 (!%p252_p10), %s754_s27, 7 }
  0x11   : > { %601 = vmatprep.subr.bf16.mxu0 (!%p252_p10), %v764_v1  ;;  %615 = vmatprep.mubr.msk.bf16.mxu1 (!%p252_p10), %vm765_vm0, %v764_v1  ;;  %v584_v24 = vld [vmem:[%s959_s4] ss:$0 sm:$0xff] (!%p252_p10)  ;;  %s488_s22 = scalar_lea.sflag (!%p252_p10), [#allocation4], %s279_s23 }
  0x12   : > { %608 = vmatpush3.bf16.msra.mxu1 (!%p252_p10), %v678_v3  ;;  %v585_v37 = vld [vmem:[%s960_s5] ss:$0 sm:$0xff] (!%p252_p10) }
  0x13   : > { %609 = vmatprep.subr.bf16.mxu1 (!%p252_p10), %v764_v1  ;;  %v586_v39 = vld [vmem:[%s961_s6] ss:$0 sm:$0xff] (!%p252_p10) }
  0x14   : > { %602 = vmatpush3.bf16.msra.mxu0 (!%p252_p10), %v677_v2 }
  0x16   : > { %s283_s21 = scalar_select %p282_p11, %s754_s27, 2  ;;  %610 = vmatpush3.bf16.msra.mxu1 %v679_v4  ;;  %v363_v17 = vld [vmem:[#allocation2] sm:$0xff] }
  0x17   : > { %611 = vmatprep.subr.bf16.mxu1 %v764_v1  ;;  %s766_s27 = smov [#allocation3]  }
  0x18   : > { %s574_s30 = sshll.u32 %s283_s21, 3  ;;  %s907_s21 = scalar_lea.hbm %s962_s7, %s588_s16 }
  0x19   : > { %s285_s12 = scalar_lea.vmem %s955_s0, %s574_s30  ;;  %s573_s30 = sshll.u32 %s279_s23, 3 }
  0x1a   : > { %v293_v5 = vld [vmem:[%s285_s12] sm:$0xff]  ;;  %612 = vmatpush3.bf16.msra.mxu1 %v680_v7  ;;  %s281_s17 = scalar_lea.vmem [#allocation3], %s573_s30  ;;  %s688_s30 = sshll.u32 %s766_s27, 4  ;;  %s689_s30 = int_to_ptr.vmem [resolvable:$false] %s688_s30 }
  0x1b   : > { %v294_v6 = vpack.c.bf16 %v293_v5, %v293_v5  ;;  %613 = vmatprep.subr.bf16.mxu1 %v764_v1  ;;  %s501_s18 = sshll.u32 %s281_s17, 4  ;;  %s690_s10 = scalar_lea.vmem %s689_s30, 256  ;;  %s909_s18 = int_to_ptr.vmem [resolvable:$true] %s501_s18 }
  0x1c   : > { %s684_s8 = scalar_lea.vmem %s909_s18, 128  ;;  %p691_p1 = scmp.lt.s32.totalorder %s909_s18, %s689_s30 }
  0x1d   : > { %604 = vmatmul.mubr.msk.bf16.vlgmr.msra.gmra.mrb[0].mxu0 %vm291_vm1, %v294_v6  ;;  %p685_p12 = scmp.ne.s32.totalorder %s909_s18, %s684_s8  ;;  %p692_p2 = scmp.lt.s32.totalorder %s690_s10, %s684_s8 }
  0x1e   : > { %614 = vmatpush3.bf16.msra.mxu1 %v681_v8 }
  0x1f   : > { %p686_p13 = pnand %p685_p12, %p847_p4  ;;  %p693_p3 = por %p692_p2, %p691_p1 }
  0x21   : > { %p687_p0 = pneg %p686_p13 }
  0x23   : > { %p694_p5 = pnand %p693_p3, %p687_p0 }
  0xf0   : > { %v356_v10 = vpop.f32.mrb[0].mxu0 }
  0xf1   : > { %v357_v11 = vadd.f32 %v575_v9, %v356_v10  ;;  %v605_v12 = vpop.f32.mrb[1].mxu0 }
  0xf2   : > { %v359_v13 = vpop.f32.mrb[2].mxu0 }
  0xf3   : > { %v362_v14 = vmax.f32 %v357_v11, 0.0  ;;  %v606_v15 = vpop.f32.mrb[3].mxu0 }
  0xf5   : > { %v364_v16 = vpack.c.bf16 %v362_v14, %v362_v14 }
  0xf7   : > { %616 = vmatmul.mubr.msk.bf16.vlgmr.msra.gmra.mrb[0].mxu1 %vm397_vm2, %v364_v16 }
 0x1ca   : > { %v435_v18 = vpop.f32.mrb[0].mxu1 }
 0x1cb   : > { %v441_v19 = vadd.f32 %v435_v18, %v363_v17  ;;  %v617_v20 = vpop.f32.mrb[1].mxu1 }
 0x1cc   : > { %v438_v21 = vpop.f32.mrb[2].mxu1 }
 0x1cd   : > { %442 = vst.msk [vmem:[#allocation2] sm:$0xff] %vm291_vm1, %v441_v19  ;;  %v618_v22 = vpop.f32.mrb[3].mxu1 }
 0x1d4   : > { %v446_v23 = vld [vmem:[#allocation2] sm:$0xff] }
 0x1d5   : > { %v447_v25 = vadd.f32 %v446_v23, %v293_v5 }
 0x1d7   : > { %v455_v26 = vadd.f32 %v584_v24, %v447_v25 }
 0x1d9   : > { %v456_v27 = vsel %vm291_vm1, %v455_v26, 0.0 }
 0x1da   : > { %457 = vadd.xlane.f32.xlu0 %v456_v27 }
 0x267   : > { %v458_v28 = vpop.xlane.xlu0 %457 }
 0x268   : > { %v460_v29 = vmul.f32 0.03125, %v458_v28 }
 0x26a   : > { %v461_v30 = vsub.f32 %v455_v26, %v460_v29 }
 0x26c   : > { %v462_v31 = vmul.f32 %v461_v30, %v461_v30 }
 0x26e   : > { %v463_v32 = vsel %vm291_vm1, %v462_v31, 0.0 }
 0x26f   : > { %464 = vadd.xlane.f32.xlu0 %v463_v32 }
 0x2fc   : > { %v465_v33 = vpop.xlane.xlu0 %464 }
 0x2fd   : > { %v466_v34 = vmul.f32 0.03125, %v465_v33 }
 0x2ff   : > { %v467_v35 = vadd.f32 1e-05, %v466_v34 }
 0x301   : > { %682 = vrsqrt.f32 %v467_v35 }
 0x30b   : > { %v683_v36 = vpop.eup %682 }
 0x30c   : > { %v469_v38 = vmul.f32 %v683_v36, %v461_v30 }
 0x30e   : > { %v477_v40 = vmul.f32 %v585_v37, %v469_v38 }
 0x310   : > { %v485_v41 = vadd.f32 %v586_v39, %v477_v40 }
 0x312   : > { %486 = vst.msk [vmem:[%s281_s17] sm:$0xff] %vm291_vm1, %v485_v41 }
 0x313   : > { %697 = shalt.err (!%p694_p5)
}
 0x314   : > { %s698_s23 = scalar_lea.hbm %s907_s21, 128  ;;  %s702_s16 = scalar_lea.hbm %s962_s7, 384 }
 0x315   : > { %p699_p6 = scmp.ne.s32.totalorder %s907_s21, %s698_s23  ;;  %p703_p10 = scmp.lt.u32.totalorder %s907_s21, %s962_s7 }
 0x316   : > { %p704_p11 = scmp.lt.u32.totalorder %s702_s16, %s698_s23  ;;  %p706_p13 = scmp.lt.u32.totalorder %s698_s23, %s907_s21 }
 0x317   : > { %p700_p7 = pnand %p699_p6, %p847_p4 }
 0x318   : > { %p705_p12 = por %p704_p11, %p703_p10 }
 0x319   : > { %p701_p9 = pneg %p700_p7 }
 0x31a   : > { %p707_p0 = por %p706_p13, %p705_p12 }
 0x31c   : > { %p708_p1 = pnand %p707_p0, %p701_p9 }
 0x31e   : > { %711 = shalt.err (!%p708_p1)
}
 0x31f   : > { %619 = dma.vmem_to_hbm [thread:$0]  (%p847_p4), %s909_s18, 128, %s907_s21, %s488_s22  }
 0x320 PF: > { %p625_p2 = scmp.ge.s32.totalorder %s762_s29, 2  ;;  %s513_s20 = sand.u32 1, %s742_s24  }
 0x321   : > { %s514_s8 = scalar_lea.sflag [#allocation4], %s513_s20 }
 0x322   : > { %p622_p3 = pnand %p625_p2, %p854_p8 }
 0x324   : > { %737 = dma.done.wait (!%p622_p3), %s514_s8, 128  }
 0x325   : > { %739 = vsyncadd (!%p622_p3), %s514_s8, 4294967168  ;;  %s20_s29 = sadd.s32 1, %s762_s29   ;;  %s965_s24 = smov %s746_s25 }
 0x326   : > { %p17_p5 = scmp.ge.s32.totalorder %s20_s29, 5   ;;  %s966_s25 = smov %s750_s26 }
 0x327   : > { %s967_s26 = smov %s860_s14  ;;  %s968_s27 = smov %s758_s28 }
 0x328   : > { %s969_s28 = smov %s971_s9  ;;  %19 = sbr.rel (!%p17_p5) target bundleno = 4 (0x4), region = 91 }
 0x32f   :  { %519 = vsyncpa [#allocation4], 1 }
 0x330   :  { %521 = vsyncpa [#allocation4 + $0x1], 1 }

// kernel: tpu_custom_call.1
= control target key start
LH: loop header
LB: loop body
LE: loop exit
PB: predicated region body
PF: predicated region fallthrough
CT: control target
= control target key end

     0   :  { %12 = vsyncpa [#allocation4], 0  ;;  %s955_s0 = inlined_call_operand.vmem [shape: f32[18,32], index: 0, kind: input, shape index: {}]   ;;  %s956_s1 = inlined_call_operand.vmem [shape: bf16[32,64], index: 1, kind: input, shape index: {}]   ;;  %s957_s2 = inlined_call_operand.vmem [shape: f32[1,64], index: 2, kind: input, shape index: {}]   ;;  %s958_s3 = inlined_call_operand.vmem [shape: bf16[64,32], index: 3, kind: input, shape index: {}]   ;;  %s959_s4 = inlined_call_operand.vmem [shape: f32[1,32], index: 4, kind: input, shape index: {}]   ;;  %s960_s5 = inlined_call_operand.vmem [shape: f32[1,32], index: 5, kind: input, shape index: {}]   ;;  %s961_s6 = inlined_call_operand.vmem [shape: f32[1,32], index: 6, kind: input, shape index: {}]   ;;  %s962_s7 = inlined_call_operand.hbm [shape: f32[18,32], index: 7, kind: output, shape index: {}]  }
   0x1   :  { %14 = vsyncpa [#allocation4 + $0x1], 0  ;;  %s807_s24 = smov 0   ;;  %s809_s25 = smov 0  }
   0x2   :  { %s811_s26 = smov 0   ;;  %s813_s27 = smov 0  }
   0x3   :  { %s815_s28 = smov 0   ;;  %s817_s29 = smov 0  }
   0x4 LB: > { %s568_s30 = sadd.s32 4294967295, %s762_s29   ;;  %s569_s8 = sadd.s32 4294967294, %s762_s29   ;;  %s762_s29 = sphi %s817_s29, %s20_s29   ;;  %s758_s28 = sphi %s815_s28, %s969_s28   ;;  %s754_s27 = sphi %s813_s27, %s968_s27   ;;  %s750_s26 = sphi %s811_s26, %s967_s26   ;;  %s746_s25 = sphi %s809_s25, %s966_s25   ;;  %s742_s24 = sphi %s807_s24, %s965_s24  }
   0x5   : > { %s32_s9 = sadd.s32 1, %s758_s28  ;;  %s191_s10 = sadd.s32 1, %s750_s26 }
   0x6   : > { %p34_p0 = scmp.ge.s32.totalorder %s32_s9, 3  ;;  %p201_p1 = scmp.ne.s32.totalorder %s750_s26, %s746_s25 }
   0x7   : > { %p202_p2 = scmp.eq.s32.totalorder %s568_s30, 2  ;;  %p207_p3 = scmp.ne.s32.totalorder %s746_s25, %s742_s24 }
   0x8   : > { %s971_s9 = smov (%p34_p0, %s32_s9), 0  ;;  %p208_p5 = scmp.eq.s32.totalorder %s569_s8, 2 }
   0x9   : > { %p847_p4 = por %p202_p2, %p201_p1  ;;  %s188_s12 = ssub.s32 %s758_s28, %s971_s9 }
   0xa   : > { %p572_p6 = scmp.ge.s32.totalorder %s762_s29, 1  ;;  %p189_p7 = scmp.eq.s32.totalorder %s188_s12, 0 }
   0xb   : > { %p854_p8 = por %p208_p5, %p207_p3  ;;  %p251_p9 = scmp.lt.s32.totalorder %s762_s29, 4 }
   0xc   : > { %s860_s14 = scalar_select %p189_p7, %s750_s26, %s191_s10  }
   0xd   : > { %p252_p10 = pnand %p572_p6, %p251_p9 }
   0xe   : > { %v676_v0 = vld [vmem:[%s956_s1] sm:$0xff] (!%p252_p10)   ;;  %v764_v1 = vmov (!%p252_p10), 0.0   ;;  %v677_v2 = vld [vmem:[%s956_s1 + $0x8] sm:$0xff] (!%p252_p10)   ;;  %vm765_vm0 = vmmov (!%p252_p10), 0   ;;  %p282_p11 = scmp.lt.s32.totalorder (!%p252_p10), %s754_s27, 2  ;;  %vm291_vm1 = vcmask (!%p252_p10), 261120  }
   0xf   : > { %255 = sbr.rel (%p252_p10) target bundleno = 800 (0x320), region = 48  ;;  %599 = vmatprep.subr.bf16.mxu0 (!%p252_p10), %v764_v1  ;;  %607 = vmatprep.subr.bf16.mxu1 (!%p252_p10), %v764_v1  ;;  %292 = vst.msk [vmem:[#allocation2] sm:$0xff] (!%p252_p10), %vm291_vm1, %v764_v1  ;;  %v678_v3 = vld [vmem:[%s958_s3] sm:$0xff] (!%p252_p10)   ;;  %v679_v4 = vld [vmem:[%s958_s3 + $0x8] sm:$0xff] (!%p252_p10)   ;;  %v680_v7 = vld [vmem:[%s958_s3 + $0x10] sm:$0xff] (!%p252_p10)   ;;  %vm397_vm2 = vcmask (!%p252_p10), 523264  }
  0x10   : > { %600 = vmatpush3.bf16.msra.mxu0 (!%p252_p10), %v676_v0  ;;  %603 = vmatprep.mubr.msk.bf16.mxu0 (!%p252_p10), %vm765_vm0, %v764_v1  ;;  %v681_v8 = vld [vmem:[%s958_s3 + $0x18] sm:$0xff] (!%p252_p10)   ;;  %v575_v9 = vld [vmem:[%s957_s2] ss:$0 sm:$0xff] (!%p252_p10)  ;;  %s279_s23 = sand.u32 (!%p252_p10), 1, %s746_s25   ;;  %s588_s16 = sshll.u32 (!%p252_p10), %s754_s27, 7 }
  0x11   : > { %601 = vmatprep.subr.bf16.mxu0 (!%p252_p10), %v764_v1  ;;  %615 = vmatprep.mubr.msk.bf16.mxu1 (!%p252_p10), %vm765_vm0, %v764_v1  ;;  %v584_v24 = vld [vmem:[%s959_s4] ss:$0 sm:$0xff] (!%p252_p10)  ;;  %s488_s22 = scalar_lea.sflag (!%p252_p10), [#allocation4], %s279_s23 }
  0x12   : > { %608 = vmatpush3.bf16.msra.mxu1 (!%p252_p10), %v678_v3  ;;  %v585_v37 = vld [vmem:[%s960_s5] ss:$0 sm:$0xff] (!%p252_p10) }
  0x13   : > { %609 = vmatprep.subr.bf16.mxu1 (!%p252_p10), %v764_v1  ;;  %v586_v39 = vld [vmem:[%s961_s6] ss:$0 sm:$0xff] (!%p252_p10) }
  0x14   : > { %602 = vmatpush3.bf16.msra.mxu0 (!%p252_p10), %v677_v2 }
  0x16   : > { %s283_s21 = scalar_select %p282_p11, %s754_s27, 2  ;;  %610 = vmatpush3.bf16.msra.mxu1 %v679_v4  ;;  %v363_v17 = vld [vmem:[#allocation2] sm:$0xff] }
  0x17   : > { %611 = vmatprep.subr.bf16.mxu1 %v764_v1  ;;  %s766_s27 = smov [#allocation3]  }
  0x18   : > { %s574_s30 = sshll.u32 %s283_s21, 3  ;;  %s907_s21 = scalar_lea.hbm %s962_s7, %s588_s16 }
  0x19   : > { %s285_s12 = scalar_lea.vmem %s955_s0, %s574_s30  ;;  %s573_s30 = sshll.u32 %s279_s23, 3 }
  0x1a   : > { %v293_v5 = vld [vmem:[%s285_s12] sm:$0xff]  ;;  %612 = vmatpush3.bf16.msra.mxu1 %v680_v7  ;;  %s281_s17 = scalar_lea.vmem [#allocation3], %s573_s30  ;;  %s688_s30 = sshll.u32 %s766_s27, 4  ;;  %s689_s30 = int_to_ptr.vmem [resolvable:$false] %s688_s30 }
  0x1b   : > { %v294_v6 = vpack.c.bf16 %v293_v5, %v293_v5  ;;  %613 = vmatprep.subr.bf16.mxu1 %v764_v1  ;;  %s501_s18 = sshll.u32 %s281_s17, 4  ;;  %s690_s10 = scalar_lea.vmem %s689_s30, 256  ;;  %s909_s18 = int_to_ptr.vmem [resolvable:$true] %s501_s18 }
  0x1c   : > { %s684_s8 = scalar_lea.vmem %s909_s18, 128  ;;  %p691_p1 = scmp.lt.s32.totalorder %s909_s18, %s689_s30 }
  0x1d   : > { %604 = vmatmul.mubr.msk.bf16.vlgmr.msra.gmra.mrb[0].mxu0 %vm291_vm1, %v294_v6  ;;  %p685_p12 = scmp.ne.s32.totalorder %s909_s18, %s684_s8  ;;  %p692_p2 = scmp.lt.s32.totalorder %s690_s10, %s684_s8 }
  0x1e   : > { %614 = vmatpush3.bf16.msra.mxu1 %v681_v8 }
  0x1f   : > { %p686_p13 = pnand %p685_p12, %p847_p4  ;;  %p693_p3 = por %p692_p2, %p691_p1 }
  0x21   : > { %p687_p0 = pneg %p686_p13 }
  0x23   : > { %p694_p5 = pnand %p693_p3, %p687_p0 }
  0xf0   : > { %v356_v10 = vpop.f32.mrb[0].mxu0 }
  0xf1   : > { %v357_v11 = vadd.f32 %v575_v9, %v356_v10  ;;  %v605_v12 = vpop.f32.mrb[1].mxu0 }
  0xf2   : > { %v359_v13 = vpop.f32.mrb[2].mxu0 }
  0xf3   : > { %v362_v14 = vmax.f32 %v357_v11, 0.0  ;;  %v606_v15 = vpop.f32.mrb[3].mxu0 }
  0xf5   : > { %v364_v16 = vpack.c.bf16 %v362_v14, %v362_v14 }
  0xf7   : > { %616 = vmatmul.mubr.msk.bf16.vlgmr.msra.gmra.mrb[0].mxu1 %vm397_vm2, %v364_v16 }
 0x1ca   : > { %v435_v18 = vpop.f32.mrb[0].mxu1 }
 0x1cb   : > { %v441_v19 = vadd.f32 %v435_v18, %v363_v17  ;;  %v617_v20 = vpop.f32.mrb[1].mxu1 }
 0x1cc   : > { %v438_v21 = vpop.f32.mrb[2].mxu1 }
 0x1cd   : > { %442 = vst.msk [vmem:[#allocation2] sm:$0xff] %vm291_vm1, %v441_v19  ;;  %v618_v22 = vpop.f32.mrb[3].mxu1 }
 0x1d4   : > { %v446_v23 = vld [vmem:[#allocation2] sm:$0xff] }
 0x1d5   : > { %v447_v25 = vadd.f32 %v446_v23, %v293_v5 }
 0x1d7   : > { %v455_v26 = vadd.f32 %v584_v24, %v447_v25 }
 0x1d9   : > { %v456_v27 = vsel %vm291_vm1, %v455_v26, 0.0 }
 0x1da   : > { %457 = vadd.xlane.f32.xlu0 %v456_v27 }
 0x267   : > { %v458_v28 = vpop.xlane.xlu0 %457 }
 0x268   : > { %v460_v29 = vmul.f32 0.03125, %v458_v28 }
 0x26a   : > { %v461_v30 = vsub.f32 %v455_v26, %v460_v29 }
 0x26c   : > { %v462_v31 = vmul.f32 %v461_v30, %v461_v30 }
 0x26e   : > { %v463_v32 = vsel %vm291_vm1, %v462_v31, 0.0 }
 0x26f   : > { %464 = vadd.xlane.f32.xlu0 %v463_v32 }
 0x2fc   : > { %v465_v33 = vpop.xlane.xlu0 %464 }
 0x2fd   : > { %v466_v34 = vmul.f32 0.03125, %v465_v33 }
 0x2ff   : > { %v467_v35 = vadd.f32 1e-05, %v466_v34 }
 0x301   : > { %682 = vrsqrt.f32 %v467_v35 }
 0x30b   : > { %v683_v36 = vpop.eup %682 }
 0x30c   : > { %v469_v38 = vmul.f32 %v683_v36, %v461_v30 }
 0x30e   : > { %v477_v40 = vmul.f32 %v585_v37, %v469_v38 }
 0x310   : > { %v485_v41 = vadd.f32 %v586_v39, %v477_v40 }
 0x312   : > { %486 = vst.msk [vmem:[%s281_s17] sm:$0xff] %vm291_vm1, %v485_v41 }
 0x313   : > { %697 = shalt.err (!%p694_p5)
}
 0x314   : > { %s698_s23 = scalar_lea.hbm %s907_s21, 128  ;;  %s702_s16 = scalar_lea.hbm %s962_s7, 384 }
 0x315   : > { %p699_p6 = scmp.ne.s32.totalorder %s907_s21, %s698_s23  ;;  %p703_p10 = scmp.lt.u32.totalorder %s907_s21, %s962_s7 }
 0x316   : > { %p704_p11 = scmp.lt.u32.totalorder %s702_s16, %s698_s23  ;;  %p706_p13 = scmp.lt.u32.totalorder %s698_s23, %s907_s21 }
 0x317   : > { %p700_p7 = pnand %p699_p6, %p847_p4 }
 0x318   : > { %p705_p12 = por %p704_p11, %p703_p10 }
 0x319   : > { %p701_p9 = pneg %p700_p7 }
 0x31a   : > { %p707_p0 = por %p706_p13, %p705_p12 }
 0x31c   : > { %p708_p1 = pnand %p707_p0, %p701_p9 }
 0x31e   : > { %711 = shalt.err (!%p708_p1)
}
 0x31f   : > { %619 = dma.vmem_to_hbm [thread:$0]  (%p847_p4), %s909_s18, 128, %s907_s21, %s488_s22  }
 0x320 PF: > { %p625_p2 = scmp.ge.s32.totalorder %s762_s29, 2  ;;  %s513_s20 = sand.u32 1, %s742_s24  }
 0x321   : > { %s514_s8 = scalar_lea.sflag [#allocation4], %s513_s20 }
 0x322   : > { %p622_p3 = pnand %p625_p2, %p854_p8 }
 0x324   : > { %737 = dma.done.wait (!%p622_p3), %s514_s8, 128  }
 0x325   : > { %739 = vsyncadd (!%p622_p3), %s514_s8, 4294967168  ;;  %s20_s29 = sadd.s32 1, %s762_s29   ;;  %s965_s24 = smov %s746_s25 }
 0x326   : > { %p17_p5 = scmp.ge.s32.totalorder %s20_s29, 5   ;;  %s966_s25 = smov %s750_s26 }
 0x327   : > { %s967_s26 = smov %s860_s14  ;;  %s968_s27 = smov %s758_s28 }
 0x328   : > { %s969_s28 = smov %s971_s9  ;;  %19 = sbr.rel (!%p17_p5) target bundleno = 4 (0x4), region = 91 }
 0x32f   :  { %519 = vsyncpa [#allocation4], 1 }
 0x330   :  { %521 = vsyncpa [#allocation4 + $0x1], 1 }

</bundles_post_ra>
